<compile_context>
chip_gen: v7x
topology: tpu7x:2x2x1
jax: 0.10.0
libtpu: 0.0.40
codegen_flags: <defaults>
</compile_context>

<pallas_src>
import functools

import jax
import jax.numpy as jnp
from jax.experimental import pallas as pl
from jax.experimental.pallas import tpu as pltpu


def _round_up(x, m):
    return (x + m - 1) // m * m


def _vmem_capacity_bytes():
    try:
        return int(pltpu.get_tpu_info().vmem_capacity_bytes)
    except Exception:
        return 64 * 1024 * 1024  # conservative fallback (v7x-sized VMEM)


# ----------------------------- fused kernel ----------------------------------


def fused_bn_relu_conv_pool_kernel(x_ref, scale_ref, shift_ref, w_ref, b_ref,
                                   o_ref):
    """BN(affine) + ReLU + 1x1x1 conv + 2x2x2 max-pool, offset-major layout.

    x_ref:     (8, tp, Cin)   slab o holds window-offset o of every pool window
    scale_ref: (1, Cin)       gamma / sqrt(var + eps)          (act dtype)
    shift_ref: (1, Cin)       beta - mean * scale              (act dtype)
    w_ref:     (Cin, Cout_p)  conv weight, zero-padded lanes   (act dtype)
    b_ref:     (1, Cout_p)    conv bias, zero-padded           (f32)
    o_ref:     (tp, Cout_p)
    """
    scale = scale_ref[...]
    shift = shift_ref[...]
    w = w_ref[...]

    acc = None
    # Static unroll: 8 matmuls with f32 accumulation; the pool is an elementwise
    # running max on the VPU (no XLU reduce competing with MXU pushes).
    for o in range(8):
        xo = x_ref[o]                                          # (tp, Cin)
        y = jnp.maximum(xo * scale + shift, 0.0)               # BN + ReLU (act dtype)
        z = jnp.dot(y, w, preferred_element_type=jnp.float32)  # (tp, Cout_p) f32
        acc = z if acc is None else jnp.maximum(acc, z)

    o_ref[...] = (acc + b_ref[...]).astype(o_ref.dtype)        # bias once, after max


# ----------------------------- wrapper ----------------------------------------


@functools.partial(jax.jit, static_argnames=("eps", "tile_p", "act_dtype"))
def transition_layer3d(x, gamma, beta, conv_w, conv_b, *,
                       eps=1e-5, tile_p=512, act_dtype=jnp.bfloat16):
    """Forward of Transition_Layer3d.  x: (N, Cin, D, H, W) (NCDHW, PyTorch layout)."""
    N, Cin, D, H, W = x.shape
    Cout = conv_w.shape[0]
    Do, Ho, Wo = D // 2, H // 2, W // 2
    P = N * Do * Ho * Wo
    out_dtype = x.dtype

    if P == 0:                                    # degenerate pooled-away output
        return jnp.zeros((N, Cout, Do, Ho, Wo), out_dtype)

    # ---- BatchNorm batch stats: ONE fused pass over x, f32 accumulators -----------
    cnt = float(N * D * H * W)
    s1 = jnp.sum(x, axis=(0, 2, 3, 4), dtype=jnp.float32)
    s2 = jnp.sum(jnp.square(x.astype(jnp.float32)), axis=(0, 2, 3, 4))
    mean = s1 / cnt
    var = jnp.maximum(s2 / cnt - jnp.square(mean), 0.0)        # biased variance
    scale = gamma.astype(jnp.float32) * jax.lax.rsqrt(var + eps)
    shift = beta.astype(jnp.float32) - mean * scale

    # ---- reorder: crop (MaxPool floor), offset-major channels-last (8, P, Cin) -----
    # Single read of x + single write of the act_dtype slab (transpose+convert fuse).
    xc = x[:, :, :2 * Do, :2 * Ho, :2 * Wo]
    x8 = xc.reshape(N, Cin, Do, 2, Ho, 2, Wo, 2)
    x8 = jnp.transpose(x8, (3, 5, 7, 0, 2, 4, 6, 1))   # (2,2,2, N,Do,Ho,Wo, Cin)
    x2d = x8.reshape(8, P, Cin).astype(act_dtype)

    # ---- tiling / VMEM budgeting ----------------------------------------------------
    Cout_p = _round_up(Cout, 128)                      # lane-dense output stores
    act_bytes = jnp.dtype(act_dtype).itemsize
    cin_l = _round_up(Cin, 128)

    def vmem_est(t):                                   # padded-lane estimate
        x_buf = 2 * 8 * t * cin_l * act_bytes          # input double-buffer
        o_buf = 2 * t * Cout_p * act_bytes             # output double-buffer
        const = (_round_up(Cin, 8) * Cout_p * act_bytes        # weight (resident once)
                 + 2 * 8 * cin_l * 4 + 8 * Cout_p * 4)         # scale/shift/bias
        temps = t * cin_l * act_bytes + 3 * t * Cout_p * 4     # y + matmul + running max
        return x_buf + o_buf + const + temps

    cap = _vmem_capacity_bytes()
    budget = max((cap * 5) // 8, 24 << 20)             # ~80 MiB on 128 MiB parts, ~40 MiB on v7x

    tp = max(8, min(_round_up(tile_p, 8), _round_up(P, 8)))
    while tp > 8 and vmem_est(tp) > budget:
        tp = _round_up(tp // 2, 8)
    steps = pl.cdiv(P, tp)
    if steps % 2 == 1 and P > 8:                       # even step count -> both TCs get equal work
        tp2 = _round_up(pl.cdiv(P, steps + 1), 8)
        if tp2 >= 8 and vmem_est(tp2) <= budget:
            tp = tp2
            steps = pl.cdiv(P, tp)
    P_out = steps * tp                                 # output rows >= P; extras sliced off

    # ---- conv weight / bias / BN affine, padded & cast -------------------------------
    w2 = conv_w.reshape(Cout, Cin).T.astype(jnp.float32)       # (Cin, Cout)
    w2 = jnp.pad(w2, ((0, 0), (0, Cout_p - Cout))).astype(act_dtype)
    b2 = jnp.pad(conv_b.astype(jnp.float32), (0, Cout_p - Cout)).reshape(1, Cout_p)
    scale2 = scale.reshape(1, Cin).astype(act_dtype)
    shift2 = shift.reshape(1, Cin).astype(act_dtype)

    vmem_limit = int(min(max(vmem_est(tp) * 5 // 4 + (4 << 20), 16 << 20),
                         cap - (8 << 20)))             # always >= estimate, <= physical-8MiB

    out_flat = pl.pallas_call(
        fused_bn_relu_conv_pool_kernel,
        out_shape=jax.ShapeDtypeStruct((P_out, Cout_p), act_dtype),
        grid=(steps,),
        in_specs=[
            pl.BlockSpec((8, tp, Cin), lambda p: (0, p, 0)),   # 8 contiguous chunks / tile
            pl.BlockSpec((1, Cin), lambda p: (0, 0)),
            pl.BlockSpec((1, Cin), lambda p: (0, 0)),
            pl.BlockSpec((Cin, Cout_p), lambda p: (0, 0)),
            pl.BlockSpec((1, Cout_p), lambda p: (0, 0)),
        ],
        out_specs=pl.BlockSpec((tp, Cout_p), lambda p: (p, 0)),
        compiler_params=pltpu.CompilerParams(
            dimension_semantics=("parallel",),
            vmem_limit_bytes=vmem_limit),
    )(x2d, scale2, shift2, w2, b2)

    out = out_flat[:P, :Cout].astype(out_dtype)
    out = out.reshape(N, Do, Ho, Wo, Cout)
    return jnp.transpose(out, (0, 4, 1, 2, 3))                 # NCDHW: (N,Cout,Do,Ho,Wo)


# ----------------------------- pure-JAX reference ------------------------------


def reference_forward(x, gamma, beta, conv_w, conv_b, eps=1e-5):
    x = x.astype(jnp.float32)
    mean = jnp.mean(x, axis=(0, 2, 3, 4), keepdims=True)
    var = jnp.var(x, axis=(0, 2, 3, 4), keepdims=True)          # biased
    g = gamma[None, :, None, None, None]
    bta = beta[None, :, None, None, None]
    y = (x - mean) / jnp.sqrt(var + eps) * g + bta
    y = jnp.maximum(y, 0.0)
    w2d = conv_w.reshape(conv_w.shape[0], conv_w.shape[1])      # (Cout, Cin)
    z = jnp.einsum("ncdhw,oc->nodhw", y, w2d) + conv_b[None, :, None, None, None]
    N_, Co, D_, H_, W_ = z.shape
    Do, Ho, Wo = D_ // 2, H_ // 2, W_ // 2
    z = z[:, :, :2 * Do, :2 * Ho, :2 * Wo]
    z = z.reshape(N_, Co, Do, 2, Ho, 2, Wo, 2)
    return jnp.max(z, axis=(3, 5, 7))


# ----------------------------- main ---------------------------------------------


if __name__ == "__main__":
    key = jax.random.PRNGKey(0)
    k_x, k_g, k_b, k_w, k_cb = jax.random.split(key, 5)

    N, Cin, Cout = 2, 4, 2
    D = H = W = 8

    x = jax.random.normal(k_x, (N, Cin, D, H, W), dtype=jnp.float32)
    gamma = 1.0 + 0.1 * jax.random.normal(k_g, (Cin,), dtype=jnp.float32)
    beta = 0.1 * jax.random.normal(k_b, (Cin,), dtype=jnp.float32)
    conv_w = 0.5 * jax.random.normal(k_w, (Cout, Cin, 1, 1, 1), dtype=jnp.float32)
    conv_b = 0.1 * jax.random.normal(k_cb, (Cout,), dtype=jnp.float32)

    ref = reference_forward(x, gamma, beta, conv_w, conv_b)

    # Default path: bf16 activations/weights, f32 stats & accumulation.
    out = jax.block_until_ready(transition_layer3d(x, gamma, beta, conv_w, conv_b))
    assert out.shape == (N, Cout, D // 2, H // 2, W // 2), out.shape
    assert jnp.allclose(out, ref, atol=5e-2, rtol=5e-2), (
        float(jnp.max(jnp.abs(out - ref))))

    # Full-precision path: tight tolerance against the f32 reference.
    out32 = jax.block_until_ready(
        transition_layer3d(x, gamma, beta, conv_w, conv_b, act_dtype=jnp.float32))
    assert jnp.allclose(out32, ref, atol=1e-4, rtol=1e-4), (
        float(jnp.max(jnp.abs(out32 - ref))))

    # Odd spatial dims + P not divisible by tile: exercises crop + ragged-tile paths.
    x2 = jax.random.normal(jax.random.PRNGKey(1), (1, Cin, 5, 6, 7), dtype=jnp.float32)
    ref2 = reference_forward(x2, gamma, beta, conv_w, conv_b)
    out2 = jax.block_until_ready(
        transition_layer3d(x2, gamma, beta, conv_w, conv_b, act_dtype=jnp.float32))
    assert out2.shape == ref2.shape, (out2.shape, ref2.shape)
    assert jnp.allclose(out2, ref2, atol=1e-4, rtol=1e-4), (
        float(jnp.max(jnp.abs(out2 - ref2))))

    print("KERNEL_OK")
</pallas_src>

<mosaic_0001>
module attributes {stable_mosaic.version = 11 : i64} {
  func.func @fused_bn_relu_conv_pool_kernel(%arg0: i32, %arg1: memref<8x64x4xbf16, #tpu.memory_space<vmem>>, %arg2: memref<1x4xbf16, #tpu.memory_space<vmem>>, %arg3: memref<1x4xbf16, #tpu.memory_space<vmem>>, %arg4: memref<4x128xbf16, #tpu.memory_space<vmem>>, %arg5: memref<1x128xf32, #tpu.memory_space<vmem>>, %arg6: memref<64x128xbf16, #tpu.memory_space<vmem>>) attributes {dimension_semantics = [#tpu.dimension_semantics<parallel>], iteration_bounds = array<i64: 2>, scalar_prefetch = 0 : i64, scratch_operands = 0 : i64, tpu.core_type = #tpu.core_type<tc>, window_params = [{transform_indices = @transform_0, window_bounds = array<i64: 8, 64, 4>}, {pipeline_mode = #tpu.pipeline_mode<synchronous>, transform_indices = @transform_1, window_bounds = array<i64: 1, 4>}, {pipeline_mode = #tpu.pipeline_mode<synchronous>, transform_indices = @transform_2, window_bounds = array<i64: 1, 4>}, {pipeline_mode = #tpu.pipeline_mode<synchronous>, transform_indices = @transform_3, window_bounds = array<i64: 4, 128>}, {pipeline_mode = #tpu.pipeline_mode<synchronous>, transform_indices = @transform_4, window_bounds = array<i64: 1, 128>}, {transform_indices = @transform_5, window_bounds = array<i64: 64, 128>}]} {
    %c0 = arith.constant 0 : index
    %c0_0 = arith.constant 0 : index
    %0 = vector.load %arg2[%c0, %c0_0] : memref<1x4xbf16, #tpu.memory_space<vmem>>, vector<1x4xbf16>
    %c0_1 = arith.constant 0 : index
    %c0_2 = arith.constant 0 : index
    %1 = vector.load %arg3[%c0_1, %c0_2] : memref<1x4xbf16, #tpu.memory_space<vmem>>, vector<1x4xbf16>
    %c0_3 = arith.constant 0 : index
    %c0_4 = arith.constant 0 : index
    %2 = vector.load %arg4[%c0_3, %c0_4] : memref<4x128xbf16, #tpu.memory_space<vmem>>, vector<4x128xbf16>
    %c0_5 = arith.constant 0 : index
    %c0_6 = arith.constant 0 : index
    %c0_7 = arith.constant 0 : index
    %3 = vector.load %arg1[%c0_5, %c0_6, %c0_7] : memref<8x64x4xbf16, #tpu.memory_space<vmem>>, vector<1x64x4xbf16>
    %4 = vector.shape_cast %3 : vector<1x64x4xbf16> to vector<64x4xbf16>
    %5 = vector.broadcast %0 : vector<1x4xbf16> to vector<64x4xbf16>
    %6 = arith.mulf %4, %5 : vector<64x4xbf16>
    %7 = vector.broadcast %1 : vector<1x4xbf16> to vector<64x4xbf16>
    %8 = arith.addf %6, %7 : vector<64x4xbf16>
    %cst = arith.constant 0.000000e+00 : bf16
    %9 = vector.broadcast %cst : bf16 to vector<64x4xbf16>
    %10 = arith.maximumf %8, %9 : vector<64x4xbf16>
    %cst_8 = arith.constant dense<0.000000e+00> : vector<64x128xf32>
    %11 = tpu.matmul %10, %2, %cst_8 {dimension_numbers = #tpu.dot_dimension_numbers<[1], [0], [0], [1], [0, 0, 1, 1], [], []>} : vector<64x4xbf16>, vector<4x128xbf16>, vector<64x128xf32> -> vector<64x128xf32>
    %c1 = arith.constant 1 : index
    %c0_9 = arith.constant 0 : index
    %c0_10 = arith.constant 0 : index
    %12 = vector.load %arg1[%c1, %c0_9, %c0_10] : memref<8x64x4xbf16, #tpu.memory_space<vmem>>, vector<1x64x4xbf16>
    %13 = vector.shape_cast %12 : vector<1x64x4xbf16> to vector<64x4xbf16>
    %14 = vector.broadcast %0 : vector<1x4xbf16> to vector<64x4xbf16>
    %15 = arith.mulf %13, %14 : vector<64x4xbf16>
    %16 = vector.broadcast %1 : vector<1x4xbf16> to vector<64x4xbf16>
    %17 = arith.addf %15, %16 : vector<64x4xbf16>
    %cst_11 = arith.constant 0.000000e+00 : bf16
    %18 = vector.broadcast %cst_11 : bf16 to vector<64x4xbf16>
    %19 = arith.maximumf %17, %18 : vector<64x4xbf16>
    %cst_12 = arith.constant dense<0.000000e+00> : vector<64x128xf32>
    %20 = tpu.matmul %19, %2, %cst_12 {dimension_numbers = #tpu.dot_dimension_numbers<[1], [0], [0], [1], [0, 0, 1, 1], [], []>} : vector<64x4xbf16>, vector<4x128xbf16>, vector<64x128xf32> -> vector<64x128xf32>
    %21 = arith.maximumf %11, %20 : vector<64x128xf32>
    %c2 = arith.constant 2 : index
    %c0_13 = arith.constant 0 : index
    %c0_14 = arith.constant 0 : index
    %22 = vector.load %arg1[%c2, %c0_13, %c0_14] : memref<8x64x4xbf16, #tpu.memory_space<vmem>>, vector<1x64x4xbf16>
    %23 = vector.shape_cast %22 : vector<1x64x4xbf16> to vector<64x4xbf16>
    %24 = vector.broadcast %0 : vector<1x4xbf16> to vector<64x4xbf16>
    %25 = arith.mulf %23, %24 : vector<64x4xbf16>
    %26 = vector.broadcast %1 : vector<1x4xbf16> to vector<64x4xbf16>
    %27 = arith.addf %25, %26 : vector<64x4xbf16>
    %cst_15 = arith.constant 0.000000e+00 : bf16
    %28 = vector.broadcast %cst_15 : bf16 to vector<64x4xbf16>
    %29 = arith.maximumf %27, %28 : vector<64x4xbf16>
    %cst_16 = arith.constant dense<0.000000e+00> : vector<64x128xf32>
    %30 = tpu.matmul %29, %2, %cst_16 {dimension_numbers = #tpu.dot_dimension_numbers<[1], [0], [0], [1], [0, 0, 1, 1], [], []>} : vector<64x4xbf16>, vector<4x128xbf16>, vector<64x128xf32> -> vector<64x128xf32>
    %31 = arith.maximumf %21, %30 : vector<64x128xf32>
    %c3 = arith.constant 3 : index
    %c0_17 = arith.constant 0 : index
    %c0_18 = arith.constant 0 : index
    %32 = vector.load %arg1[%c3, %c0_17, %c0_18] : memref<8x64x4xbf16, #tpu.memory_space<vmem>>, vector<1x64x4xbf16>
    %33 = vector.shape_cast %32 : vector<1x64x4xbf16> to vector<64x4xbf16>
    %34 = vector.broadcast %0 : vector<1x4xbf16> to vector<64x4xbf16>
    %35 = arith.mulf %33, %34 : vector<64x4xbf16>
    %36 = vector.broadcast %1 : vector<1x4xbf16> to vector<64x4xbf16>
    %37 = arith.addf %35, %36 : vector<64x4xbf16>
    %cst_19 = arith.constant 0.000000e+00 : bf16
    %38 = vector.broadcast %cst_19 : bf16 to vector<64x4xbf16>
    %39 = arith.maximumf %37, %38 : vector<64x4xbf16>
    %cst_20 = arith.constant dense<0.000000e+00> : vector<64x128xf32>
    %40 = tpu.matmul %39, %2, %cst_20 {dimension_numbers = #tpu.dot_dimension_numbers<[1], [0], [0], [1], [0, 0, 1, 1], [], []>} : vector<64x4xbf16>, vector<4x128xbf16>, vector<64x128xf32> -> vector<64x128xf32>
    %41 = arith.maximumf %31, %40 : vector<64x128xf32>
    %c4 = arith.constant 4 : index
    %c0_21 = arith.constant 0 : index
    %c0_22 = arith.constant 0 : index
    %42 = vector.load %arg1[%c4, %c0_21, %c0_22] : memref<8x64x4xbf16, #tpu.memory_space<vmem>>, vector<1x64x4xbf16>
    %43 = vector.shape_cast %42 : vector<1x64x4xbf16> to vector<64x4xbf16>
    %44 = vector.broadcast %0 : vector<1x4xbf16> to vector<64x4xbf16>
    %45 = arith.mulf %43, %44 : vector<64x4xbf16>
    %46 = vector.broadcast %1 : vector<1x4xbf16> to vector<64x4xbf16>
    %47 = arith.addf %45, %46 : vector<64x4xbf16>
    %cst_23 = arith.constant 0.000000e+00 : bf16
    %48 = vector.broadcast %cst_23 : bf16 to vector<64x4xbf16>
    %49 = arith.maximumf %47, %48 : vector<64x4xbf16>
    %cst_24 = arith.constant dense<0.000000e+00> : vector<64x128xf32>
    %50 = tpu.matmul %49, %2, %cst_24 {dimension_numbers = #tpu.dot_dimension_numbers<[1], [0], [0], [1], [0, 0, 1, 1], [], []>} : vector<64x4xbf16>, vector<4x128xbf16>, vector<64x128xf32> -> vector<64x128xf32>
    %51 = arith.maximumf %41, %50 : vector<64x128xf32>
    %c5 = arith.constant 5 : index
    %c0_25 = arith.constant 0 : index
    %c0_26 = arith.constant 0 : index
    %52 = vector.load %arg1[%c5, %c0_25, %c0_26] : memref<8x64x4xbf16, #tpu.memory_space<vmem>>, vector<1x64x4xbf16>
    %53 = vector.shape_cast %52 : vector<1x64x4xbf16> to vector<64x4xbf16>
    %54 = vector.broadcast %0 : vector<1x4xbf16> to vector<64x4xbf16>
    %55 = arith.mulf %53, %54 : vector<64x4xbf16>
    %56 = vector.broadcast %1 : vector<1x4xbf16> to vector<64x4xbf16>
    %57 = arith.addf %55, %56 : vector<64x4xbf16>
    %cst_27 = arith.constant 0.000000e+00 : bf16
    %58 = vector.broadcast %cst_27 : bf16 to vector<64x4xbf16>
    %59 = arith.maximumf %57, %58 : vector<64x4xbf16>
    %cst_28 = arith.constant dense<0.000000e+00> : vector<64x128xf32>
    %60 = tpu.matmul %59, %2, %cst_28 {dimension_numbers = #tpu.dot_dimension_numbers<[1], [0], [0], [1], [0, 0, 1, 1], [], []>} : vector<64x4xbf16>, vector<4x128xbf16>, vector<64x128xf32> -> vector<64x128xf32>
    %61 = arith.maximumf %51, %60 : vector<64x128xf32>
    %c6 = arith.constant 6 : index
    %c0_29 = arith.constant 0 : index
    %c0_30 = arith.constant 0 : index
    %62 = vector.load %arg1[%c6, %c0_29, %c0_30] : memref<8x64x4xbf16, #tpu.memory_space<vmem>>, vector<1x64x4xbf16>
    %63 = vector.shape_cast %62 : vector<1x64x4xbf16> to vector<64x4xbf16>
    %64 = vector.broadcast %0 : vector<1x4xbf16> to vector<64x4xbf16>
    %65 = arith.mulf %63, %64 : vector<64x4xbf16>
    %66 = vector.broadcast %1 : vector<1x4xbf16> to vector<64x4xbf16>
    %67 = arith.addf %65, %66 : vector<64x4xbf16>
    %cst_31 = arith.constant 0.000000e+00 : bf16
    %68 = vector.broadcast %cst_31 : bf16 to vector<64x4xbf16>
    %69 = arith.maximumf %67, %68 : vector<64x4xbf16>
    %cst_32 = arith.constant dense<0.000000e+00> : vector<64x128xf32>
    %70 = tpu.matmul %69, %2, %cst_32 {dimension_numbers = #tpu.dot_dimension_numbers<[1], [0], [0], [1], [0, 0, 1, 1], [], []>} : vector<64x4xbf16>, vector<4x128xbf16>, vector<64x128xf32> -> vector<64x128xf32>
    %71 = arith.maximumf %61, %70 : vector<64x128xf32>
    %c7 = arith.constant 7 : index
    %c0_33 = arith.constant 0 : index
    %c0_34 = arith.constant 0 : index
    %72 = vector.load %arg1[%c7, %c0_33, %c0_34] : memref<8x64x4xbf16, #tpu.memory_space<vmem>>, vector<1x64x4xbf16>
    %73 = vector.shape_cast %72 : vector<1x64x4xbf16> to vector<64x4xbf16>
    %74 = vector.broadcast %0 : vector<1x4xbf16> to vector<64x4xbf16>
    %75 = arith.mulf %73, %74 : vector<64x4xbf16>
    %76 = vector.broadcast %1 : vector<1x4xbf16> to vector<64x4xbf16>
    %77 = arith.addf %75, %76 : vector<64x4xbf16>
    %cst_35 = arith.constant 0.000000e+00 : bf16
    %78 = vector.broadcast %cst_35 : bf16 to vector<64x4xbf16>
    %79 = arith.maximumf %77, %78 : vector<64x4xbf16>
    %cst_36 = arith.constant dense<0.000000e+00> : vector<64x128xf32>
    %80 = tpu.matmul %79, %2, %cst_36 {dimension_numbers = #tpu.dot_dimension_numbers<[1], [0], [0], [1], [0, 0, 1, 1], [], []>} : vector<64x4xbf16>, vector<4x128xbf16>, vector<64x128xf32> -> vector<64x128xf32>
    %81 = arith.maximumf %71, %80 : vector<64x128xf32>
    %c0_37 = arith.constant 0 : index
    %c0_38 = arith.constant 0 : index
    %82 = vector.load %arg5[%c0_37, %c0_38] : memref<1x128xf32, #tpu.memory_space<vmem>>, vector<1x128xf32>
    %83 = vector.broadcast %82 : vector<1x128xf32> to vector<64x128xf32>
    %84 = arith.addf %81, %83 : vector<64x128xf32>
    %85 = arith.truncf %84 : vector<64x128xf32> to vector<64x128xbf16>
    %c0_39 = arith.constant 0 : index
    %c0_40 = arith.constant 0 : index
    %86 = vector.load %arg6[%c0_39, %c0_40] : memref<64x128xbf16, #tpu.memory_space<vmem>>, vector<64x128xbf16>
    tpu.vector_store %arg6[%c0_39, %c0_40], %85 {strides = array<i32>} : memref<64x128xbf16, #tpu.memory_space<vmem>>, vector<64x128xbf16>,
    return
  }
  func.func @transform_0(%arg0: i32) -> (i32, i32, i32) {
    %c0_i32 = arith.constant 0 : i32
    %c0_i32_0 = arith.constant 0 : i32
    %c0_i32_1 = arith.constant 0 : i32
    return %c0_i32, %arg0, %c0_i32_0 : i32, i32, i32
  }
  func.func @transform_1(%arg0: i32) -> (i32, i32) {
    %c0_i32 = arith.constant 0 : i32
    %c0_i32_0 = arith.constant 0 : i32
    %c0_i32_1 = arith.constant 0 : i32
    return %c0_i32, %c0_i32_0 : i32, i32
  }
  func.func @transform_2(%arg0: i32) -> (i32, i32) {
    %c0_i32 = arith.constant 0 : i32
    %c0_i32_0 = arith.constant 0 : i32
    %c0_i32_1 = arith.constant 0 : i32
    return %c0_i32, %c0_i32_0 : i32, i32
  }
  func.func @transform_3(%arg0: i32) -> (i32, i32) {
    %c0_i32 = arith.constant 0 : i32
    %c0_i32_0 = arith.constant 0 : i32
    %c0_i32_1 = arith.constant 0 : i32
    return %c0_i32, %c0_i32_0 : i32, i32
  }
  func.func @transform_4(%arg0: i32) -> (i32, i32) {
    %c0_i32 = arith.constant 0 : i32
    %c0_i32_0 = arith.constant 0 : i32
    %c0_i32_1 = arith.constant 0 : i32
    return %c0_i32, %c0_i32_0 : i32, i32
  }
  func.func @transform_5(%arg0: i32) -> (i32, i32) {
    %c0_i32 = arith.constant 0 : i32
    %c0_i32_0 = arith.constant 0 : i32
    return %arg0, %c0_i32 : i32, i32
  }
}

</mosaic_0001>

<bundles_post_ra>
// kernel: transition_layer3d.1
= control target key start
LH: loop header
LB: loop body
LE: loop exit
PB: predicated region body
PF: predicated region fallthrough
CT: control target
= control target key end

     0   :  { %s2148_s18 = smov 0   ;;  %s2150_s19 = smov 0   ;;  %s2604_s0 = inlined_call_operand.vmem [shape: bf16[8,128,4], index: 0, kind: input, shape index: {}]   ;;  %s2605_s1 = inlined_call_operand.vmem [shape: bf16[1,4], index: 1, kind: input, shape index: {}]   ;;  %s2606_s2 = inlined_call_operand.vmem [shape: bf16[1,4], index: 2, kind: input, shape index: {}]   ;;  %s2607_s3 = inlined_call_operand.vmem [shape: bf16[4,128], index: 3, kind: input, shape index: {}]   ;;  %s2608_s4 = inlined_call_operand.vmem [shape: f32[1,128], index: 4, kind: input, shape index: {}]   ;;  %s2609_s5 = inlined_call_operand.vmem [shape: bf16[128,128], index: 5, kind: output, shape index: {}]  }
   0x1   :  { %s2152_s20 = smov 0  }
   0x2 LB: > { %s1764_s21 = sadd.s32 4294967295, %s2115_s20   ;;  %s2165_s22 = sadd.s32 1, %s2115_s20   ;;  %s2115_s20 = sphi %s2152_s20, %s2612_s20   ;;  %s2111_s19 = sphi %s2150_s19, %s2611_s19   ;;  %s2107_s18 = sphi %s2148_s18, %s2610_s18  }
   0x3   : > { %s19_s23 = ssub.s32 %s2115_s20, %s2165_s22  ;;  %s22_s24 = sadd.s32 1, %s2111_s19 }
   0x4   : > { %p20_p0 = scmp.eq.s32.totalorder %s19_s23, 0  ;;  %p29_p1 = scmp.ne.s32.totalorder %s2111_s19, %s2107_s18 }
   0x5   : > { %p30_p2 = scmp.eq.s32.totalorder %s2115_s20, 0  ;;  %p1767_p4 = scmp.ge.s32.totalorder %s2115_s20, 2 }
   0x6   : > { %s2174_s25 = scalar_select %p20_p0, %s2111_s19, %s22_s24  }
   0x7   : > { %p31_p3 = por %p30_p2, %p29_p1  ;;  %177 = sbr.rel (%p1767_p4) target bundleno = 34 (0x22), region = 32 }
   0xe   : > { %180 = sbr.rel (!%p31_p3) target bundleno = 34 (0x22), region = 36  ;;  %s182_s26 = sand.u32 (%p31_p3), 1, %s2111_s19  }
   0xf   : > { %s1908_s27 = sshll.u32 (%p31_p3), %s2115_s20, 5  ;;  %s1768_s28 = sshll.u32 (%p31_p3), %s182_s26, 8 }
  0x10   : > { %s2182_s6 = scalar_lea.vmem (%p31_p3), %s2604_s0, %s1908_s27  ;;  %s2187_s7 = scalar_lea.vmem (%p31_p3), [#allocation2], %s1768_s28 }
  0x11   : > { %v203_v0 = vld [vmem:[%s2182_s6] sm:$0xff] (%p31_p3)   ;;  %v207_v1 = vld [vmem:[%s2182_s6 + $0x8] sm:$0xff] (%p31_p3)   ;;  %v211_v2 = vld [vmem:[%s2182_s6 + $0x10] sm:$0xff] (%p31_p3)  }
  0x12   : > { %204 = vst [vmem:[%s2187_s7] sm:$0xff] (%p31_p3), %v203_v0   ;;  %208 = vst [vmem:[%s2187_s7 + $0x8] sm:$0xff] (%p31_p3), %v207_v1   ;;  %v215_v3 = vld [vmem:[%s2182_s6 + $0x18] sm:$0xff] (%p31_p3)   ;;  %v219_v4 = vld [vmem:[%s2182_s6 + $0x40] sm:$0xff] (%p31_p3)  }
  0x13   : > { %212 = vst [vmem:[%s2187_s7 + $0x10] sm:$0xff] (%p31_p3), %v211_v2   ;;  %v223_v5 = vld [vmem:[%s2182_s6 + $0x48] sm:$0xff] (%p31_p3)   ;;  %216 = vst [vmem:[%s2187_s7 + $0x18] sm:$0xff] (%p31_p3), %v215_v3   ;;  %v227_v6 = vld [vmem:[%s2182_s6 + $0x50] sm:$0xff] (%p31_p3)  }
  0x14   : > { %220 = vst [vmem:[%s2187_s7 + $0x20] sm:$0xff] (%p31_p3), %v219_v4   ;;  %224 = vst [vmem:[%s2187_s7 + $0x28] sm:$0xff] (%p31_p3), %v223_v5   ;;  %v231_v7 = vld [vmem:[%s2182_s6 + $0x58] sm:$0xff] (%p31_p3)   ;;  %v235_v8 = vld [vmem:[%s2182_s6 + $0x80] sm:$0xff] (%p31_p3)  }
  0x15   : > { %228 = vst [vmem:[%s2187_s7 + $0x30] sm:$0xff] %v227_v6   ;;  %232 = vst [vmem:[%s2187_s7 + $0x38] sm:$0xff] %v231_v7   ;;  %v239_v9 = vld [vmem:[%s2182_s6 + $0x88] sm:$0xff]   ;;  %v243_v10 = vld [vmem:[%s2182_s6 + $0x90] sm:$0xff]  }
  0x16   : > { %236 = vst [vmem:[%s2187_s7 + $0x40] sm:$0xff] %v235_v8   ;;  %v247_v11 = vld [vmem:[%s2182_s6 + $0x98] sm:$0xff]   ;;  %240 = vst [vmem:[%s2187_s7 + $0x48] sm:$0xff] %v239_v9   ;;  %v251_v12 = vld [vmem:[%s2182_s6 + $0xc0] sm:$0xff]  }
  0x17   : > { %244 = vst [vmem:[%s2187_s7 + $0x50] sm:$0xff] %v243_v10   ;;  %248 = vst [vmem:[%s2187_s7 + $0x58] sm:$0xff] %v247_v11   ;;  %v255_v13 = vld [vmem:[%s2182_s6 + $0xc8] sm:$0xff]   ;;  %v259_v14 = vld [vmem:[%s2182_s6 + $0xd0] sm:$0xff]  }
  0x18   : > { %252 = vst [vmem:[%s2187_s7 + $0x60] sm:$0xff] %v251_v12   ;;  %256 = vst [vmem:[%s2187_s7 + $0x68] sm:$0xff] %v255_v13   ;;  %v263_v15 = vld [vmem:[%s2182_s6 + $0xd8] sm:$0xff]   ;;  %v267_v16 = vld [vmem:[%s2182_s6 + $0x100] sm:$0xff]  }
  0x19   : > { %260 = vst [vmem:[%s2187_s7 + $0x70] sm:$0xff] %v259_v14   ;;  %v271_v17 = vld [vmem:[%s2182_s6 + $0x108] sm:$0xff]   ;;  %264 = vst [vmem:[%s2187_s7 + $0x78] sm:$0xff] %v263_v15   ;;  %v275_v18 = vld [vmem:[%s2182_s6 + $0x110] sm:$0xff]  }
  0x1a   : > { %268 = vst [vmem:[%s2187_s7 + $0x80] sm:$0xff] %v267_v16   ;;  %272 = vst [vmem:[%s2187_s7 + $0x88] sm:$0xff] %v271_v17   ;;  %v279_v19 = vld [vmem:[%s2182_s6 + $0x118] sm:$0xff]   ;;  %v283_v20 = vld [vmem:[%s2182_s6 + $0x140] sm:$0xff]  }
  0x1b   : > { %276 = vst [vmem:[%s2187_s7 + $0x90] sm:$0xff] %v275_v18   ;;  %280 = vst [vmem:[%s2187_s7 + $0x98] sm:$0xff] %v279_v19   ;;  %v287_v21 = vld [vmem:[%s2182_s6 + $0x148] sm:$0xff]   ;;  %v291_v22 = vld [vmem:[%s2182_s6 + $0x150] sm:$0xff]  }
  0x1c   : > { %284 = vst [vmem:[%s2187_s7 + $0xa0] sm:$0xff] %v283_v20   ;;  %v295_v23 = vld [vmem:[%s2182_s6 + $0x158] sm:$0xff]   ;;  %288 = vst [vmem:[%s2187_s7 + $0xa8] sm:$0xff] %v287_v21   ;;  %v299_v24 = vld [vmem:[%s2182_s6 + $0x180] sm:$0xff]  }
  0x1d   : > { %292 = vst [vmem:[%s2187_s7 + $0xb0] sm:$0xff] %v291_v22   ;;  %296 = vst [vmem:[%s2187_s7 + $0xb8] sm:$0xff] %v295_v23   ;;  %v303_v25 = vld [vmem:[%s2182_s6 + $0x188] sm:$0xff]   ;;  %v307_v26 = vld [vmem:[%s2182_s6 + $0x190] sm:$0xff]  }
  0x1e   : > { %300 = vst [vmem:[%s2187_s7 + $0xc0] sm:$0xff] %v299_v24   ;;  %304 = vst [vmem:[%s2187_s7 + $0xc8] sm:$0xff] %v303_v25   ;;  %v311_v27 = vld [vmem:[%s2182_s6 + $0x198] sm:$0xff]   ;;  %v315_v28 = vld [vmem:[%s2182_s6 + $0x1c0] sm:$0xff]  }
  0x1f   : > { %308 = vst [vmem:[%s2187_s7 + $0xd0] sm:$0xff] %v307_v26   ;;  %v319_v29 = vld [vmem:[%s2182_s6 + $0x1c8] sm:$0xff]   ;;  %312 = vst [vmem:[%s2187_s7 + $0xd8] sm:$0xff] %v311_v27   ;;  %v323_v30 = vld [vmem:[%s2182_s6 + $0x1d0] sm:$0xff]  }
  0x20   : > { %316 = vst [vmem:[%s2187_s7 + $0xe0] sm:$0xff] %v315_v28   ;;  %320 = vst [vmem:[%s2187_s7 + $0xe8] sm:$0xff] %v319_v29   ;;  %v327_v31 = vld [vmem:[%s2182_s6 + $0x1d8] sm:$0xff]  }
  0x21   : > { %324 = vst [vmem:[%s2187_s7 + $0xf0] sm:$0xff] %v323_v30   ;;  %328 = vst [vmem:[%s2187_s7 + $0xf8] sm:$0xff] %v327_v31  }
  0x22 PF: > { %p1771_p5 = scmp.ge.s32.totalorder %s2115_s20, 1  ;;  %p480_p6 = scmp.lt.s32.totalorder %s2115_s20, 3 }
  0x24   : > { %p481_p7 = pnand %p1771_p5, %p480_p6 }
  0x25   : > { %v2255_v32 = vld [vmem:[%s2607_s3] sm:$0x3] (!%p481_p7)  ;;  %vm612_vm0 = vcmask (!%p481_p7), 1041408   ;;  %s487_s10 = sand.u32 (!%p481_p7), 1, %s2107_s18   ;;  %v536_v34 = vlaneseq (!%p481_p7)  ;;  %vm599_vm1 = vcmask (!%p481_p7), 31744   ;;  %v2117_v7 = vmov (!%p481_p7), 0  }
  0x26   : > { %484 = sbr.rel (%p481_p7) target bundleno = 337 (0x151), region = 77  ;;  %v522_v33 = vld [vmem:[%s2605_s1] sm:$0x1] (!%p481_p7)  ;;  %2060 = vmatprep.subr.msk.bf16.mxu0 (!%p481_p7), %vm612_vm0, %v2255_v32  ;;  %v2265_v35 = vsel (!%p481_p7), %vm612_vm0, %v2255_v32, 0  ;;  %2061 = vmatprep.subr.msk.bf16.mxu1 (!%p481_p7), %vm612_vm0, %v2255_v32  ;;  %s1772_s13 = sshll.u32 (!%p481_p7), %s487_s10, 8 }
  0x27   : > { %v523_v36 = vld [vmem:[%s2606_s2] sm:$0x1] (!%p481_p7)  ;;  %1981 = vmatpush3.bf16.msra.mxu0 (!%p481_p7), %v2265_v35  ;;  %1991 = vmatpush3.bf16.msra.mxu1 (!%p481_p7), %v2265_v35  ;;  %v534_v37 = vpack.i.b16 (!%p481_p7), %v522_v33, %v522_v33  ;;  %v537_v38 = vshrl.u32 (!%p481_p7), %v536_v34, 7  ;;  %s2278_s16 = scalar_lea.vmem (!%p481_p7), [#allocation2], %s1772_s13  ;;  %s1773_s17 = sshll.u32 (!%p481_p7), %s1764_s21, 3 }
  0x28   : > { %v553_v39 = vpack.i.b16 (!%p481_p7), %v523_v36, %v523_v36  ;;  %2062 = vmatprep.subr.msk.bf16.mxu0 (!%p481_p7), %vm612_vm0, %v2255_v32  ;;  %2063 = vmatprep.subr.msk.bf16.mxu1 (!%p481_p7), %vm612_vm0, %v2255_v32  ;;  %v525_v41 = vld [vmem:[%s2278_s16] sm:$0xf] (!%p481_p7)  ;;  %v526_v42 = vld [vmem:[%s2278_s16 + $0x4] sm:$0xf] (!%p481_p7)  ;;  %v527_v47 = vld [vmem:[%s2278_s16 + $0x8] sm:$0xf] (!%p481_p7) }
  0x29   : > { %v538_v40 = vsub.s32 (!%p481_p7), 0, %v537_v38  ;;  %v1785_v45 = vld [vmem:[%s2278_s16 + $0x20] sm:$0xf] (!%p481_p7)  ;;  %v1786_v46 = vld [vmem:[%s2278_s16 + $0x24] sm:$0xf] (!%p481_p7)  ;;  %p516_p8 = scmp.lt.s32.totalorder (!%p481_p7), %s1773_s17, 15 }
  0x2a   : > { %v528_v50 = vld [vmem:[%s2278_s16 + $0xc] sm:$0xf] (!%p481_p7)  ;;  %v1787_v51 = vld [vmem:[%s2278_s16 + $0x28] sm:$0xf] (!%p481_p7)  ;;  %v529_v5 = vld [vmem:[%s2278_s16 + $0x10] sm:$0xf] (!%p481_p7) }
  0x2b   : > { %v539_v43 = vrot.slane (!%p481_p7), %v534_v37, %v538_v40  ;;  %v558_v44 = vrot.slane (!%p481_p7), %v553_v39, %v538_v40  ;;  %v1788_v52 = vld [vmem:[%s2278_s16 + $0x2c] sm:$0xf] (!%p481_p7)  ;;  %v530_v6 = vld [vmem:[%s2278_s16 + $0x14] sm:$0xf] (!%p481_p7)  ;;  %v1789_v12 = vld [vmem:[%s2278_s16 + $0x30] sm:$0xf] (!%p481_p7) }
  0x2c   : > { %v1790_v13 = vld [vmem:[%s2278_s16 + $0x34] sm:$0xf] (!%p481_p7)  ;;  %v531_v18 = vld [vmem:[%s2278_s16 + $0x18] sm:$0xf] (!%p481_p7)  ;;  %v532_v23 = vld [vmem:[%s2278_s16 + $0x1c] sm:$0xf] (!%p481_p7) }
  0x2d   : > { %v2285_v48 = vcombine.low %v539_v43, %v539_v43  ;;  %v2287_v49 = vcombine.low %v558_v44, %v558_v44  ;;  %v1791_v31 = vld [vmem:[%s2278_s16 + $0x38] sm:$0xf]  ;;  %v1792_v37 = vld [vmem:[%s2278_s16 + $0x3c] sm:$0xf]  ;;  %v1801_v38 = vld [vmem:[%s2278_s16 + $0x40] sm:$0xf] }
  0x2e   : > { %s2614_s17 = smov (!%p516_p8, %s1773_s17), 15 }
  0x2f   : > { %v544_v53 = vmul.bf16 %v2285_v48, %v525_v41  ;;  %v545_v54 = vmul.bf16 %v2285_v48, %v526_v42  ;;  %v690_v55 = vmul.bf16 %v1785_v45, %v2285_v48  ;;  %v691_v56 = vmul.bf16 %v1786_v46, %v2285_v48  ;;  %v1802_v42 = vld [vmem:[%s2278_s16 + $0x44] sm:$0xf]  ;;  %s1774_s21 = sshll.u32 %s2614_s17, 2 }
  0x30   : > { %v546_v57 = vmul.bf16 %v2285_v48, %v527_v47  ;;  %v547_v58 = vmul.bf16 %v2285_v48, %v528_v50  ;;  %v692_v59 = vmul.bf16 %v1787_v51, %v2285_v48  ;;  %v693_v60 = vmul.bf16 %v1788_v52, %v2285_v48  ;;  %v1817_v47 = vld [vmem:[%s2278_s16 + $0x60] sm:$0xf]  ;;  %v1818_v50 = vld [vmem:[%s2278_s16 + $0x64] sm:$0xf]  ;;  %s519_s26 = scalar_lea.vmem %s2609_s5, %s1774_s21 }
  0x31   : > { %v563_v61 = vadd.bf16 %v2287_v49, %v544_v53  ;;  %v564_v62 = vadd.bf16 %v2287_v49, %v545_v54  ;;  %v698_v63 = vadd.bf16 %v2287_v49, %v690_v55  ;;  %v699_v0 = vadd.bf16 %v2287_v49, %v691_v56  ;;  %v1803_v55 = vld [vmem:[%s2278_s16 + $0x48] sm:$0xf] }
  0x32   : > { %v565_v1 = vadd.bf16 %v2287_v49, %v546_v57  ;;  %v566_v2 = vadd.bf16 %v2287_v49, %v547_v58  ;;  %v700_v3 = vadd.bf16 %v2287_v49, %v692_v59  ;;  %v701_v4 = vadd.bf16 %v2287_v49, %v693_v60 }
  0x33   : > { %v571_v8 = vmax.bf16 %v2117_v7, %v563_v61  ;;  %v572_v9 = vmax.bf16 %v2117_v7, %v564_v62  ;;  %v706_v10 = vmax.bf16 %v2117_v7, %v698_v63  ;;  %v707_v11 = vmax.bf16 %v2117_v7, %v699_v0  ;;  %v1804_v0 = vld [vmem:[%s2278_s16 + $0x4c] sm:$0xf] }
  0x34   : > { %v573_v14 = vmax.bf16 %v2117_v7, %v565_v1  ;;  %v574_v15 = vmax.bf16 %v2117_v7, %v566_v2  ;;  %v708_v16 = vmax.bf16 %v2117_v7, %v700_v3  ;;  %v709_v17 = vmax.bf16 %v2117_v7, %v701_v4  ;;  %v1819_v1 = vld [vmem:[%s2278_s16 + $0x68] sm:$0xf] }
  0x35   : > { %v1777_v19 = vcombine.low %v571_v8, %v572_v9  ;;  %v1793_v20 = vcombine.low %v706_v10, %v707_v11  ;;  %v548_v21 = vmul.bf16 %v2285_v48, %v529_v5  ;;  %v549_v22 = vmul.bf16 %v2285_v48, %v530_v6  ;;  %v1820_v6 = vld [vmem:[%s2278_s16 + $0x6c] sm:$0xf] }
  0x36   : > { %v1778_v24 = vcombine.low %v573_v14, %v574_v15  ;;  %v1794_v25 = vcombine.low %v708_v16, %v709_v17  ;;  %v694_v26 = vmul.bf16 %v1789_v12, %v2285_v48  ;;  %v695_v27 = vmul.bf16 %v1790_v13, %v2285_v48  ;;  %v1805_v16 = vld [vmem:[%s2278_s16 + $0x50] sm:$0xf]  ;;  %v1806_v17 = vld [vmem:[%s2278_s16 + $0x54] sm:$0xf] }
  0x37   : > { %1982 = vmatprep.mubr.msk.bf16.mxu0 %vm599_vm1, %v1777_v19  ;;  %1992 = vmatprep.mubr.msk.bf16.mxu1 %vm599_vm1, %v1793_v20  ;;  %v567_v28 = vadd.bf16 %v2287_v49, %v548_v21  ;;  %v568_v29 = vadd.bf16 %v2287_v49, %v549_v22  ;;  %v550_v30 = vmul.bf16 %v2285_v48, %v531_v18  ;;  %v1821_v22 = vld [vmem:[%s2278_s16 + $0x70] sm:$0xf] }
  0x38   : > { %1983 = vmatmul.mubr.msk.bf16.vlgmr.msra.gmra.mrb[0].mxu0 %vm599_vm1, %v1778_v24  ;;  %1993 = vmatmul.mubr.msk.bf16.vlgmr.msra.gmra.mrb[0].mxu1 %vm599_vm1, %v1794_v25  ;;  %v702_v33 = vadd.bf16 %v2287_v49, %v694_v26  ;;  %v703_v34 = vadd.bf16 %v2287_v49, %v695_v27  ;;  %v551_v36 = vmul.bf16 %v2285_v48, %v532_v23  ;;  %v1822_v23 = vld [vmem:[%s2278_s16 + $0x74] sm:$0xf] }
  0x39   : > { %2001 = vmatpush3.bf16.msra.mxu0 %v2265_v35  ;;  %2011 = vmatpush3.bf16.msra.mxu1 %v2265_v35  ;;  %v575_v39 = vmax.bf16 %v2117_v7, %v567_v28  ;;  %v576_v40 = vmax.bf16 %v2117_v7, %v568_v29  ;;  %v569_v41 = vadd.bf16 %v2287_v49, %v550_v30  ;;  %v1807_v28 = vld [vmem:[%s2278_s16 + $0x58] sm:$0xf] }
  0x3a   : > { %v710_v43 = vmax.bf16 %v2117_v7, %v702_v33  ;;  %v711_v44 = vmax.bf16 %v2117_v7, %v703_v34  ;;  %v570_v45 = vadd.bf16 %v2287_v49, %v551_v36  ;;  %v696_v46 = vmul.bf16 %v1791_v31, %v2285_v48  ;;  %2064 = vmatprep.subr.msk.bf16.mxu0 %vm612_vm0, %v2255_v32  ;;  %v1808_v34 = vld [vmem:[%s2278_s16 + $0x5c] sm:$0xf] }
  0x3b   : > { %v1779_v51 = vcombine.low %v575_v39, %v576_v40  ;;  %v577_v52 = vmax.bf16 %v2117_v7, %v569_v41  ;;  %v697_v53 = vmul.bf16 %v1792_v37, %v2285_v48  ;;  %v828_v54 = vmul.bf16 %v1801_v38, %v2285_v48  ;;  %2065 = vmatprep.subr.msk.bf16.mxu1 %vm612_vm0, %v2255_v32 }
  0x3c   : > { %v1795_v56 = vcombine.low %v710_v43, %v711_v44  ;;  %v578_v57 = vmax.bf16 %v2117_v7, %v570_v45  ;;  %v704_v58 = vadd.bf16 %v2287_v49, %v696_v46  ;;  %v829_v59 = vmul.bf16 %v1802_v42, %v2285_v48  ;;  %v1823_v44 = vld [vmem:[%s2278_s16 + $0x78] sm:$0xf] }
  0x3d   : > { %1986 = vmatprep.mubr.msk.bf16.mxu0 %vm599_vm1, %v1779_v51  ;;  %v705_v60 = vadd.bf16 %v2287_v49, %v697_v53  ;;  %v836_v61 = vadd.bf16 %v2287_v49, %v828_v54  ;;  %v966_v62 = vmul.bf16 %v1817_v47, %v2285_v48  ;;  %v967_v63 = vmul.bf16 %v1818_v50, %v2285_v48  ;;  %v1824_v51 = vld [vmem:[%s2278_s16 + $0x7c] sm:$0xf] }
  0x3e   : > { %1996 = vmatprep.mubr.msk.bf16.mxu1 %vm599_vm1, %v1795_v56  ;;  %v1780_v2 = vcombine.low %v577_v52, %v578_v57  ;;  %v712_v3 = vmax.bf16 %v2117_v7, %v704_v58  ;;  %v837_v4 = vadd.bf16 %v2287_v49, %v829_v59  ;;  %v830_v5 = vmul.bf16 %v1803_v55, %v2285_v48  ;;  %v1833_v52 = vld [vmem:[%s2278_s16 + $0x80] sm:$0xf]  ;;  %v1834_v57 = vld [vmem:[%s2278_s16 + $0x84] sm:$0xf] }
  0x3f   : > { %v713_v8 = vmax.bf16 %v2117_v7, %v705_v60  ;;  %v844_v9 = vmax.bf16 %v2117_v7, %v836_v61  ;;  %v974_v10 = vadd.bf16 %v2287_v49, %v966_v62  ;;  %v975_v11 = vadd.bf16 %v2287_v49, %v967_v63  ;;  %v1849_v62 = vld [vmem:[%s2278_s16 + $0xa0] sm:$0xf] }
  0x40   : > { %1987 = vmatmul.mubr.msk.bf16.gmra.mrb[4].mxu0 %vm599_vm1, %v1780_v2  ;;  %v845_v12 = vmax.bf16 %v2117_v7, %v837_v4  ;;  %v831_v13 = vmul.bf16 %v1804_v0, %v2285_v48  ;;  %v838_v14 = vadd.bf16 %v2287_v49, %v830_v5  ;;  %v968_v15 = vmul.bf16 %v1819_v1, %v2285_v48 }
  0x41   : > { %v1796_v18 = vcombine.low %v712_v3, %v713_v8  ;;  %v982_v19 = vmax.bf16 %v2117_v7, %v974_v10  ;;  %v983_v20 = vmax.bf16 %v2117_v7, %v975_v11  ;;  %v969_v21 = vmul.bf16 %v1820_v6, %v2285_v48  ;;  %v1850_v8 = vld [vmem:[%s2278_s16 + $0xa4] sm:$0xf] }
  0x42   : > { %v1809_v24 = vcombine.low %v844_v9, %v845_v12  ;;  %v839_v25 = vadd.bf16 %v2287_v49, %v831_v13  ;;  %v846_v26 = vmax.bf16 %v2117_v7, %v838_v14  ;;  %v976_v27 = vadd.bf16 %v2287_v49, %v968_v15  ;;  %v1835_v12 = vld [vmem:[%s2278_s16 + $0x88] sm:$0xf]  ;;  %v1836_v13 = vld [vmem:[%s2278_s16 + $0x8c] sm:$0xf] }
  0x43   : > { %1997 = vmatmul.mubr.msk.bf16.gmra.mrb[4].mxu1 %vm599_vm1, %v1796_v18  ;;  %v1825_v29 = vcombine.low %v982_v19, %v983_v20  ;;  %v977_v30 = vadd.bf16 %v2287_v49, %v969_v21  ;;  %v832_v31 = vmul.bf16 %v1805_v16, %v2285_v48  ;;  %v833_v33 = vmul.bf16 %v1806_v17, %v2285_v48  ;;  %v1851_v14 = vld [vmem:[%s2278_s16 + $0xa8] sm:$0xf]  ;;  %v1852_v18 = vld [vmem:[%s2278_s16 + $0xac] sm:$0xf] }
  0x44   : > { %2002 = vmatprep.mubr.msk.bf16.mxu0 %vm599_vm1, %v1809_v24  ;;  %v847_v36 = vmax.bf16 %v2117_v7, %v839_v25  ;;  %v984_v37 = vmax.bf16 %v2117_v7, %v976_v27  ;;  %v970_v38 = vmul.bf16 %v1821_v22, %v2285_v48  ;;  %v971_v39 = vmul.bf16 %v1822_v23, %v2285_v48  ;;  %v1837_v27 = vld [vmem:[%s2278_s16 + $0x90] sm:$0xf] }
  0x45   : > { %2012 = vmatprep.mubr.msk.bf16.mxu1 %vm599_vm1, %v1825_v29  ;;  %v985_v40 = vmax.bf16 %v2117_v7, %v977_v30  ;;  %v840_v41 = vadd.bf16 %v2287_v49, %v832_v31  ;;  %v841_v42 = vadd.bf16 %v2287_v49, %v833_v33  ;;  %v834_v43 = vmul.bf16 %v1807_v28, %v2285_v48  ;;  %v1838_v28 = vld [vmem:[%s2278_s16 + $0x94] sm:$0xf] }
  0x46   : > { %v1810_v45 = vcombine.low %v846_v26, %v847_v36  ;;  %v978_v46 = vadd.bf16 %v2287_v49, %v970_v38  ;;  %v979_v47 = vadd.bf16 %v2287_v49, %v971_v39  ;;  %v835_v50 = vmul.bf16 %v1808_v34, %v2285_v48 }
  0x47   : > { %v1826_v53 = vcombine.low %v984_v37, %v985_v40  ;;  %v848_v54 = vmax.bf16 %v2117_v7, %v840_v41  ;;  %v849_v55 = vmax.bf16 %v2117_v7, %v841_v42  ;;  %v842_v56 = vadd.bf16 %v2287_v49, %v834_v43  ;;  %v1854_v43 = vld [vmem:[%s2278_s16 + $0xb4] sm:$0xf] }
  0x48   : > { %2003 = vmatmul.mubr.msk.bf16.vlgmr.msra.gmra.mrb[8].mxu0 %vm599_vm1, %v1810_v45  ;;  %v986_v58 = vmax.bf16 %v2117_v7, %v978_v46  ;;  %v987_v59 = vmax.bf16 %v2117_v7, %v979_v47  ;;  %v843_v60 = vadd.bf16 %v2287_v49, %v835_v50  ;;  %v972_v61 = vmul.bf16 %v1823_v44, %v2285_v48  ;;  %v1839_v44 = vld [vmem:[%s2278_s16 + $0x98] sm:$0xf] }
  0x49   : > { %2021 = vmatpush3.bf16.msra.mxu0 %v2265_v35  ;;  %v1811_v63 = vcombine.low %v848_v54, %v849_v55  ;;  %v850_v0 = vmax.bf16 %v2117_v7, %v842_v56  ;;  %v973_v1 = vmul.bf16 %v1824_v51, %v2285_v48  ;;  %v1104_v2 = vmul.bf16 %v1833_v52, %v2285_v48  ;;  %v1840_v51 = vld [vmem:[%s2278_s16 + $0x9c] sm:$0xf]  ;;  %v1855_v56 = vld [vmem:[%s2278_s16 + $0xb8] sm:$0xf] }
  0x4a   : > { %v1827_v3 = vcombine.low %v986_v58, %v987_v59  ;;  %v851_v4 = vmax.bf16 %v2117_v7, %v843_v60  ;;  %v980_v5 = vadd.bf16 %v2287_v49, %v972_v61  ;;  %v1105_v6 = vmul.bf16 %v1834_v57, %v2285_v48  ;;  %2066 = vmatprep.subr.msk.bf16.mxu0 %vm612_vm0, %v2255_v32  ;;  %v1856_v61 = vld [vmem:[%s2278_s16 + $0xbc] sm:$0xf] }
  0x4b   : > { %2013 = vmatmul.mubr.msk.bf16.vlgmr.msra.gmra.mrb[8].mxu1 %vm599_vm1, %v1826_v53  ;;  %2006 = vmatprep.mubr.msk.bf16.mxu0 %vm599_vm1, %v1811_v63  ;;  %v981_v9 = vadd.bf16 %v2287_v49, %v973_v1  ;;  %v1112_v10 = vadd.bf16 %v2287_v49, %v1104_v2  ;;  %v1242_v11 = vmul.bf16 %v1849_v62, %v2285_v48  ;;  %v1865_v62 = vld [vmem:[%s2278_s16 + $0xc0] sm:$0xf] }
  0x4c   : > { %2031 = vmatpush3.bf16.msra.mxu1 %v2265_v35  ;;  %2016 = vmatprep.mubr.msk.bf16.mxu1 %vm599_vm1, %v1827_v3  ;;  %v1812_v15 = vcombine.low %v850_v0, %v851_v4  ;;  %v988_v16 = vmax.bf16 %v2117_v7, %v980_v5  ;;  %v1113_v17 = vadd.bf16 %v2287_v49, %v1105_v6  ;;  %v1866_v3 = vld [vmem:[%s2278_s16 + $0xc4] sm:$0xf] }
  0x4d   : > { %v989_v19 = vmax.bf16 %v2117_v7, %v981_v9  ;;  %v1120_v20 = vmax.bf16 %v2117_v7, %v1112_v10  ;;  %v1243_v21 = vmul.bf16 %v1850_v8, %v2285_v48  ;;  %v1250_v22 = vadd.bf16 %v2287_v49, %v1242_v11  ;;  %2067 = vmatprep.subr.msk.bf16.mxu1 %vm612_vm0, %v2255_v32  ;;  %v1853_v32 = vld [vmem:[%s2278_s16 + $0xb0] sm:$0xf] }
  0x4e   : > { %v1121_v23 = vmax.bf16 %v2117_v7, %v1113_v17  ;;  %v1106_v24 = vmul.bf16 %v1835_v12, %v2285_v48  ;;  %v1107_v25 = vmul.bf16 %v1836_v13, %v2285_v48  ;;  %v1244_v26 = vmul.bf16 %v1851_v14, %v2285_v48  ;;  %v1881_v13 = vld [vmem:[%s2278_s16 + $0xe0] sm:$0xf] }
  0x4f   : > { %v1828_v29 = vcombine.low %v988_v16, %v989_v19  ;;  %v1251_v30 = vadd.bf16 %v2287_v49, %v1243_v21  ;;  %v1258_v31 = vmax.bf16 %v2117_v7, %v1250_v22  ;;  %v1245_v33 = vmul.bf16 %v1852_v18, %v2285_v48  ;;  %v1882_v18 = vld [vmem:[%s2278_s16 + $0xe4] sm:$0xf]  ;;  %v1867_v22 = vld [vmem:[%s2278_s16 + $0xc8] sm:$0xf] }
  0x50   : > { %2007 = vmatmul.mubr.msk.bf16.gmra.mrb[12].mxu0 %vm599_vm1, %v1812_v15  ;;  %v1841_v34 = vcombine.low %v1120_v20, %v1121_v23  ;;  %v1114_v36 = vadd.bf16 %v2287_v49, %v1106_v24  ;;  %v1115_v37 = vadd.bf16 %v2287_v49, %v1107_v25  ;;  %v1252_v38 = vadd.bf16 %v2287_v49, %v1244_v26 }
  0x51   : > { %v1259_v39 = vmax.bf16 %v2117_v7, %v1251_v30  ;;  %v1253_v40 = vadd.bf16 %v2287_v49, %v1245_v33  ;;  %v1108_v41 = vmul.bf16 %v1837_v27, %v2285_v48  ;;  %v1109_v42 = vmul.bf16 %v1838_v28, %v2285_v48  ;;  %v1868_v27 = vld [vmem:[%s2278_s16 + $0xcc] sm:$0xf]  ;;  %v1883_v28 = vld [vmem:[%s2278_s16 + $0xe8] sm:$0xf] }
  0x52   : > { %2022 = vmatprep.mubr.msk.bf16.mxu0 %vm599_vm1, %v1841_v34  ;;  %v1122_v45 = vmax.bf16 %v2117_v7, %v1114_v36  ;;  %v1123_v46 = vmax.bf16 %v2117_v7, %v1115_v37  ;;  %v1260_v47 = vmax.bf16 %v2117_v7, %v1252_v38  ;;  %v1246_v50 = vmul.bf16 %v1853_v32, %v2285_v48  ;;  %v1884_v32 = vld [vmem:[%s2278_s16 + $0xec] sm:$0xf]  ;;  %v1869_v38 = vld [vmem:[%s2278_s16 + $0xd0] sm:$0xf] }
  0x53   : > { %2017 = vmatmul.mubr.msk.bf16.gmra.mrb[12].mxu1 %vm599_vm1, %v1828_v29  ;;  %v1857_v52 = vcombine.low %v1258_v31, %v1259_v39  ;;  %v1261_v53 = vmax.bf16 %v2117_v7, %v1253_v40  ;;  %v1116_v54 = vadd.bf16 %v2287_v49, %v1108_v41  ;;  %v1117_v55 = vadd.bf16 %v2287_v49, %v1109_v42 }
  0x54   : > { %v1842_v57 = vcombine.low %v1122_v45, %v1123_v46  ;;  %v1247_v58 = vmul.bf16 %v1854_v43, %v2285_v48  ;;  %v1254_v59 = vadd.bf16 %v2287_v49, %v1246_v50  ;;  %v1110_v60 = vmul.bf16 %v1839_v44, %v2285_v48  ;;  %v1870_v43 = vld [vmem:[%s2278_s16 + $0xd4] sm:$0xf] }
  0x55   : > { %2032 = vmatprep.mubr.msk.bf16.mxu1 %vm599_vm1, %v1857_v52  ;;  %v1858_v63 = vcombine.low %v1260_v47, %v1261_v53  ;;  %v1124_v0 = vmax.bf16 %v2117_v7, %v1116_v54  ;;  %v1125_v1 = vmax.bf16 %v2117_v7, %v1117_v55  ;;  %v1111_v2 = vmul.bf16 %v1840_v51, %v2285_v48  ;;  %v1886_v54 = vld [vmem:[%s2278_s16 + $0xf4] sm:$0xf] }
  0x56   : > { %v1255_v4 = vadd.bf16 %v2287_v49, %v1247_v58  ;;  %v1262_v5 = vmax.bf16 %v2117_v7, %v1254_v59  ;;  %v1118_v6 = vadd.bf16 %v2287_v49, %v1110_v60  ;;  %v1248_v8 = vmul.bf16 %v1855_v56, %v2285_v48  ;;  %v1871_v59 = vld [vmem:[%s2278_s16 + $0xd8] sm:$0xf]  ;;  %v1872_v60 = vld [vmem:[%s2278_s16 + $0xdc] sm:$0xf] }
  0x57   : > { %v1843_v9 = vcombine.low %v1124_v0, %v1125_v1  ;;  %v1119_v10 = vadd.bf16 %v2287_v49, %v1111_v2  ;;  %v1249_v11 = vmul.bf16 %v1856_v61, %v2285_v48  ;;  %v1380_v12 = vmul.bf16 %v1865_v62, %v2285_v48 }
  0x58   : > { %2023 = vmatmul.mubr.msk.bf16.vlgmr.msra.gmra.mrb[16].mxu0 %vm599_vm1, %v1842_v57  ;;  %v1263_v14 = vmax.bf16 %v2117_v7, %v1255_v4  ;;  %v1126_v15 = vmax.bf16 %v2117_v7, %v1118_v6  ;;  %v1256_v16 = vadd.bf16 %v2287_v49, %v1248_v8  ;;  %v1381_v17 = vmul.bf16 %v1866_v3, %v2285_v48  ;;  %v1887_v4 = vld [vmem:[%s2278_s16 + $0xf8] sm:$0xf] }
  0x59   : > { %2041 = vmatpush3.bf16.msra.mxu0 %v2265_v35  ;;  %2026 = vmatprep.mubr.msk.bf16.mxu0 %vm599_vm1, %v1843_v9  ;;  %v1127_v19 = vmax.bf16 %v2117_v7, %v1119_v10  ;;  %v1257_v20 = vadd.bf16 %v2287_v49, %v1249_v11  ;;  %v1388_v21 = vadd.bf16 %v2287_v49, %v1380_v12 }
  0x5a   : > { %v1859_v23 = vcombine.low %v1262_v5, %v1263_v14  ;;  %v1264_v24 = vmax.bf16 %v2117_v7, %v1256_v16  ;;  %v1389_v25 = vadd.bf16 %v2287_v49, %v1381_v17  ;;  %v1518_v26 = vmul.bf16 %v1881_v13, %v2285_v48  ;;  %v1888_v5 = vld [vmem:[%s2278_s16 + $0xfc] sm:$0xf] }
  0x5b   : > { %2033 = vmatmul.mubr.msk.bf16.vlgmr.msra.gmra.mrb[16].mxu1 %vm599_vm1, %v1858_v63  ;;  %v1844_v29 = vcombine.low %v1126_v15, %v1127_v19  ;;  %v1265_v30 = vmax.bf16 %v2117_v7, %v1257_v20  ;;  %v1396_v31 = vmax.bf16 %v2117_v7, %v1388_v21  ;;  %v1519_v33 = vmul.bf16 %v1882_v18, %v2285_v48 }
  0x5c   : > { %2051 = vmatpush3.bf16.msra.mxu1 %v2265_v35  ;;  %2036 = vmatprep.mubr.msk.bf16.mxu1 %vm599_vm1, %v1859_v23  ;;  %v1397_v34 = vmax.bf16 %v2117_v7, %v1389_v25  ;;  %v1526_v36 = vadd.bf16 %v2287_v49, %v1518_v26  ;;  %v1382_v37 = vmul.bf16 %v1867_v22, %v2285_v48  ;;  %v1885_v35 = vld [vmem:[%s2278_s16 + $0xf0] sm:$0xf] }
  0x5d   : > { %v1860_v39 = vcombine.low %v1264_v24, %v1265_v30  ;;  %v1527_v40 = vadd.bf16 %v2287_v49, %v1519_v33  ;;  %v1383_v41 = vmul.bf16 %v1868_v27, %v2285_v48  ;;  %v1520_v42 = vmul.bf16 %v1883_v28, %v2285_v48 }
  0x5e   : > { %v1873_v44 = vcombine.low %v1396_v31, %v1397_v34  ;;  %v1534_v45 = vmax.bf16 %v2117_v7, %v1526_v36  ;;  %v1390_v46 = vadd.bf16 %v2287_v49, %v1382_v37  ;;  %v1521_v47 = vmul.bf16 %v1884_v32, %v2285_v48 }
  0x5f   : > { %v1535_v50 = vmax.bf16 %v2117_v7, %v1527_v40  ;;  %v1391_v51 = vadd.bf16 %v2287_v49, %v1383_v41  ;;  %v1528_v52 = vadd.bf16 %v2287_v49, %v1520_v42  ;;  %v1384_v53 = vmul.bf16 %v1869_v38, %v2285_v48 }
  0x60   : > { %2027 = vmatmul.mubr.msk.bf16.gmra.mrb[20].mxu0 %vm599_vm1, %v1844_v29  ;;  %v1398_v55 = vmax.bf16 %v2117_v7, %v1390_v46  ;;  %v1529_v56 = vadd.bf16 %v2287_v49, %v1521_v47  ;;  %v1385_v57 = vmul.bf16 %v1870_v43, %v2285_v48  ;;  %v1522_v58 = vmul.bf16 %v1885_v35, %v2285_v48 }
  0x61   : > { %2042 = vmatprep.mubr.msk.bf16.mxu0 %vm599_vm1, %v1873_v44  ;;  %v1889_v61 = vcombine.low %v1534_v45, %v1535_v50  ;;  %v1399_v62 = vmax.bf16 %v2117_v7, %v1391_v51  ;;  %v1392_v63 = vadd.bf16 %v2287_v49, %v1384_v53  ;;  %v1536_v0 = vmax.bf16 %v2117_v7, %v1528_v52 }
  0x62   : > { %v1393_v1 = vadd.bf16 %v2287_v49, %v1385_v57  ;;  %v1523_v2 = vmul.bf16 %v1886_v54, %v2285_v48  ;;  %v1530_v3 = vadd.bf16 %v2287_v49, %v1522_v58  ;;  %v1537_v6 = vmax.bf16 %v2117_v7, %v1529_v56 }
  0x63   : > { %2037 = vmatmul.mubr.msk.bf16.gmra.mrb[20].mxu1 %vm599_vm1, %v1860_v39  ;;  %v1400_v8 = vmax.bf16 %v2117_v7, %v1392_v63  ;;  %v1386_v9 = vmul.bf16 %v1871_v59, %v2285_v48  ;;  %v1387_v10 = vmul.bf16 %v1872_v60, %v2285_v48  ;;  %v1874_v11 = vcombine.low %v1398_v55, %v1399_v62 }
  0x64   : > { %2052 = vmatprep.mubr.msk.bf16.mxu1 %vm599_vm1, %v1889_v61  ;;  %v1401_v12 = vmax.bf16 %v2117_v7, %v1393_v1  ;;  %v1531_v13 = vadd.bf16 %v2287_v49, %v1523_v2  ;;  %v1538_v14 = vmax.bf16 %v2117_v7, %v1530_v3  ;;  %v1524_v17 = vmul.bf16 %v1887_v4, %v2285_v48 }
  0x65   : > { %v1394_v15 = vadd.bf16 %v2287_v49, %v1386_v9  ;;  %v1395_v16 = vadd.bf16 %v2287_v49, %v1387_v10  ;;  %v1525_v18 = vmul.bf16 %v1888_v5, %v2285_v48  ;;  %v1890_v21 = vcombine.low %v1536_v0, %v1537_v6 }
  0x66   : > { %v1875_v19 = vcombine.low %v1400_v8, %v1401_v12  ;;  %v1539_v20 = vmax.bf16 %v2117_v7, %v1531_v13  ;;  %v1532_v22 = vadd.bf16 %v2287_v49, %v1524_v17 }
  0x67   : > { %v1533_v23 = vadd.bf16 %v2287_v49, %v1525_v18  ;;  %v1402_v25 = vmax.bf16 %v2117_v7, %v1394_v15  ;;  %v1403_v26 = vmax.bf16 %v2117_v7, %v1395_v16 }
  0x68   : > { %2043 = vmatmul.mubr.msk.bf16.vlgmr.msra.gmra.mrb[24].mxu0 %vm599_vm1, %v1874_v11  ;;  %v1891_v24 = vcombine.low %v1538_v14, %v1539_v20  ;;  %v1540_v48 = vmax.bf16 %v2117_v7, %v1532_v22 }
  0x69   : > { %2046 = vmatprep.mubr.msk.bf16.mxu0 %vm599_vm1, %v1875_v19  ;;  %v1541_v27 = vmax.bf16 %v2117_v7, %v1533_v23  ;;  %v1876_v28 = vcombine.low %v1402_v25, %v1403_v26 }
  0x6b   : > { %2053 = vmatmul.mubr.msk.bf16.vlgmr.msra.gmra.mrb[24].mxu1 %vm599_vm1, %v1890_v21  ;;  %v1892_v29 = vcombine.low %v1540_v48, %v1541_v27 }
  0x6c   : > { %2056 = vmatprep.mubr.msk.bf16.mxu1 %vm599_vm1, %v1891_v24 }
  0x70   : > { %2047 = vmatmul.mubr.msk.bf16.gmra.mrb[28].mxu0 %vm599_vm1, %v1876_v28 }
  0x73   : > { %2057 = vmatmul.mubr.msk.bf16.gmra.mrb[28].mxu1 %vm599_vm1, %v1892_v29 }
 0x10b   : > { %v1984_v49 = vpop.f32.mrb[0].mxu0  ;;  %v1994_v30 = vpop.f32.mrb[0].mxu1 }
 0x10c   : > { %v813_v31 = vmax.f32 %v1984_v49, %v1994_v30  ;;  %v650_v33 = vpop.f32.mrb[1].mxu0  ;;  %v780_v32 = vpop.f32.mrb[1].mxu1 }
 0x10d   : > { %v811_v34 = vmax.f32 %v650_v33, %v780_v32  ;;  %v1985_v36 = vpop.f32.mrb[2].mxu0  ;;  %v1995_v37 = vpop.f32.mrb[2].mxu1 }
 0x10e   : > { %v814_v38 = vmax.f32 %v1985_v36, %v1995_v37  ;;  %v653_v39 = vpop.f32.mrb[3].mxu0  ;;  %v783_v40 = vpop.f32.mrb[3].mxu1 }
 0x10f   : > { %v812_v7 = vmax.f32 %v653_v39, %v783_v40 }
 0x113   : > { %v1988_v41 = vpop.f32.mrb[4].mxu0 }
 0x114   : > { %v666_v42 = vpop.f32.mrb[5].mxu0 }
 0x115   : > { %v1989_v43 = vpop.f32.mrb[6].mxu0 }
 0x116   : > { %v1998_v35 = vpop.f32.mrb[4].mxu1  ;;  %v669_v44 = vpop.f32.mrb[7].mxu0 }
 0x117   : > { %v817_v45 = vmax.f32 %v1988_v41, %v1998_v35  ;;  %v796_v46 = vpop.f32.mrb[5].mxu1 }
 0x118   : > { %v815_v47 = vmax.f32 %v666_v42, %v796_v46  ;;  %v1999_v50 = vpop.f32.mrb[6].mxu1 }
 0x119   : > { %v818_v51 = vmax.f32 %v1989_v43, %v1999_v50  ;;  %v799_v52 = vpop.f32.mrb[7].mxu1 }
 0x11a   : > { %v816_v53 = vmax.f32 %v669_v44, %v799_v52 }
 0x11b   : > { %v2004_v54 = vpop.f32.mrb[8].mxu0 }
 0x11c   : > { %v951_v55 = vmax.f32 %v813_v31, %v2004_v54  ;;  %v918_v56 = vpop.f32.mrb[9].mxu0 }
 0x11d   : > { %v949_v57 = vmax.f32 %v811_v34, %v918_v56  ;;  %v2005_v58 = vpop.f32.mrb[10].mxu0 }
 0x11e   : > { %v2014_v59 = vpop.f32.mrb[8].mxu1  ;;  %v952_v60 = vmax.f32 %v814_v38, %v2005_v58  ;;  %v921_v61 = vpop.f32.mrb[11].mxu0 }
 0x11f   : > { %v1089_v62 = vmax.f32 %v951_v55, %v2014_v59  ;;  %v1056_v63 = vpop.f32.mrb[9].mxu1  ;;  %v950_v0 = vmax.f32 %v812_v7, %v921_v61 }
 0x120   : > { %v1087_v1 = vmax.f32 %v949_v57, %v1056_v63  ;;  %v2015_v2 = vpop.f32.mrb[10].mxu1 }
 0x121   : > { %v1090_v3 = vmax.f32 %v952_v60, %v2015_v2  ;;  %v1059_v4 = vpop.f32.mrb[11].mxu1 }
 0x122   : > { %v1088_v5 = vmax.f32 %v950_v0, %v1059_v4 }
 0x123   : > { %v2008_v6 = vpop.f32.mrb[12].mxu0 }
 0x124   : > { %v955_v8 = vmax.f32 %v817_v45, %v2008_v6  ;;  %v934_v9 = vpop.f32.mrb[13].mxu0 }
 0x125   : > { %v953_v10 = vmax.f32 %v815_v47, %v934_v9  ;;  %v2009_v11 = vpop.f32.mrb[14].mxu0 }
 0x126   : > { %v2018_v12 = vpop.f32.mrb[12].mxu1  ;;  %v956_v13 = vmax.f32 %v818_v51, %v2009_v11  ;;  %v937_v14 = vpop.f32.mrb[15].mxu0 }
 0x127   : > { %v1093_v15 = vmax.f32 %v955_v8, %v2018_v12  ;;  %v1072_v16 = vpop.f32.mrb[13].mxu1  ;;  %v954_v17 = vmax.f32 %v816_v53, %v937_v14 }
 0x128   : > { %v1091_v18 = vmax.f32 %v953_v10, %v1072_v16  ;;  %v2019_v19 = vpop.f32.mrb[14].mxu1 }
 0x129   : > { %v1094_v20 = vmax.f32 %v956_v13, %v2019_v19  ;;  %v1075_v21 = vpop.f32.mrb[15].mxu1 }
 0x12a   : > { %v1092_v22 = vmax.f32 %v954_v17, %v1075_v21 }
 0x12b   : > { %v2024_v23 = vpop.f32.mrb[16].mxu0 }
 0x12c   : > { %v1227_v24 = vmax.f32 %v1089_v62, %v2024_v23  ;;  %v1194_v25 = vpop.f32.mrb[17].mxu0 }
 0x12d   : > { %v1225_v26 = vmax.f32 %v1087_v1, %v1194_v25  ;;  %v2025_v48 = vpop.f32.mrb[18].mxu0  ;;  %v1897_v1 = vld [vmem:[%s2608_s4] ss:$0 sm:$0xff] }
 0x12e   : > { %v2034_v27 = vpop.f32.mrb[16].mxu1  ;;  %v1228_v28 = vmax.f32 %v1090_v3, %v2025_v48  ;;  %v1197_v29 = vpop.f32.mrb[19].mxu0 }
 0x12f   : > { %v1365_v49 = vmax.f32 %v1227_v24, %v2034_v27  ;;  %v1332_v30 = vpop.f32.mrb[17].mxu1  ;;  %v1226_v31 = vmax.f32 %v1088_v5, %v1197_v29 }
 0x130   : > { %v1363_v33 = vmax.f32 %v1225_v26, %v1332_v30  ;;  %v2035_v32 = vpop.f32.mrb[18].mxu1 }
 0x131   : > { %v1366_v34 = vmax.f32 %v1228_v28, %v2035_v32  ;;  %v1335_v36 = vpop.f32.mrb[19].mxu1 }
 0x132   : > { %v1364_v37 = vmax.f32 %v1226_v31, %v1335_v36 }
 0x133   : > { %v2028_v38 = vpop.f32.mrb[20].mxu0 }
 0x134   : > { %v1231_v39 = vmax.f32 %v1093_v15, %v2028_v38  ;;  %v1210_v40 = vpop.f32.mrb[21].mxu0 }
 0x135   : > { %v1229_v7 = vmax.f32 %v1091_v18, %v1210_v40  ;;  %v2029_v41 = vpop.f32.mrb[22].mxu0 }
 0x136   : > { %v2038_v42 = vpop.f32.mrb[20].mxu1  ;;  %v1232_v43 = vmax.f32 %v1094_v20, %v2029_v41  ;;  %v1213_v35 = vpop.f32.mrb[23].mxu0 }
 0x137   : > { %v1369_v44 = vmax.f32 %v1231_v39, %v2038_v42  ;;  %v1348_v45 = vpop.f32.mrb[21].mxu1  ;;  %v1230_v46 = vmax.f32 %v1092_v22, %v1213_v35 }
 0x138   : > { %v1367_v47 = vmax.f32 %v1229_v7, %v1348_v45  ;;  %v2039_v50 = vpop.f32.mrb[22].mxu1 }
 0x139   : > { %v1370_v51 = vmax.f32 %v1232_v43, %v2039_v50  ;;  %v1351_v52 = vpop.f32.mrb[23].mxu1 }
 0x13a   : > { %v1368_v53 = vmax.f32 %v1230_v46, %v1351_v52 }
 0x13b   : > { %v2044_v54 = vpop.f32.mrb[24].mxu0 }
 0x13c   : > { %v1503_v55 = vmax.f32 %v1365_v49, %v2044_v54  ;;  %v1470_v56 = vpop.f32.mrb[25].mxu0 }
 0x13d   : > { %v1501_v57 = vmax.f32 %v1363_v33, %v1470_v56  ;;  %v2045_v58 = vpop.f32.mrb[26].mxu0 }
 0x13e   : > { %v2054_v59 = vpop.f32.mrb[24].mxu1  ;;  %v1504_v60 = vmax.f32 %v1366_v34, %v2045_v58  ;;  %v1473_v61 = vpop.f32.mrb[27].mxu0 }
 0x13f   : > { %v1641_v62 = vmax.f32 %v1503_v55, %v2054_v59  ;;  %v1608_v63 = vpop.f32.mrb[25].mxu1  ;;  %v1502_v0 = vmax.f32 %v1364_v37, %v1473_v61 }
 0x140   : > { %v1639_v2 = vmax.f32 %v1501_v57, %v1608_v63  ;;  %v2055_v3 = vpop.f32.mrb[26].mxu1 }
 0x141   : > { %v1642_v4 = vmax.f32 %v1504_v60, %v2055_v3  ;;  %v1611_v5 = vpop.f32.mrb[27].mxu1  ;;  %v1656_v8 = vadd.f32 %v1897_v1, %v1641_v62 }
 0x142   : > { %v1640_v6 = vmax.f32 %v1502_v0, %v1611_v5  ;;  %v1654_v11 = vadd.f32 %v1897_v1, %v1639_v2 }
 0x143   : > { %v1657_v9 = vadd.f32 %v1897_v1, %v1642_v4  ;;  %v2048_v10 = vpop.f32.mrb[28].mxu0 }
 0x144   : > { %v1655_v12 = vadd.f32 %v1897_v1, %v1640_v6  ;;  %v1507_v13 = vmax.f32 %v1369_v44, %v2048_v10  ;;  %v1486_v14 = vpop.f32.mrb[29].mxu0 }
 0x145   : > { %v1925_v15 = vpack.c.bf16 %v1657_v9, %v1656_v8  ;;  %v1505_v16 = vmax.f32 %v1367_v47, %v1486_v14  ;;  %v2049_v17 = vpop.f32.mrb[30].mxu0 }
 0x146   : > { %v1920_v18 = vpack.c.bf16 %v1655_v12, %v1654_v11  ;;  %v2058_v19 = vpop.f32.mrb[28].mxu1  ;;  %v1508_v20 = vmax.f32 %v1370_v51, %v2049_v17  ;;  %v1489_v21 = vpop.f32.mrb[31].mxu0 }
 0x147   : > { %1937 = vst [vmem:[%s519_s26 + $0x8] sm:$0xff] %v1925_v15   ;;  %v1645_v22 = vmax.f32 %v1507_v13, %v2058_v19  ;;  %v1624_v23 = vpop.f32.mrb[29].mxu1  ;;  %v1506_v24 = vmax.f32 %v1368_v53, %v1489_v21 }
 0x148   : > { %1921 = vst [vmem:[%s519_s26] sm:$0xff] %v1920_v18   ;;  %v1643_v25 = vmax.f32 %v1505_v16, %v1624_v23  ;;  %v2059_v26 = vpop.f32.mrb[30].mxu1 }
 0x149   : > { %v1646_v48 = vmax.f32 %v1508_v20, %v2059_v26  ;;  %v1627_v27 = vpop.f32.mrb[31].mxu1  ;;  %v1660_v29 = vadd.f32 %v1897_v1, %v1645_v22 }
 0x14a   : > { %v1644_v28 = vmax.f32 %v1506_v24, %v1627_v27  ;;  %v1658_v30 = vadd.f32 %v1897_v1, %v1643_v25 }
 0x14b   : > { %v1661_v49 = vadd.f32 %v1897_v1, %v1646_v48 }
 0x14c   : > { %v1659_v31 = vadd.f32 %v1897_v1, %v1644_v28 }
 0x14d   : > { %v1935_v33 = vpack.c.bf16 %v1661_v49, %v1660_v29 }
 0x14e   : > { %v1930_v32 = vpack.c.bf16 %v1659_v31, %v1658_v30 }
 0x14f   : > { %1939 = vst [vmem:[%s519_s26 + $0x18] sm:$0xff] %v1935_v33  }
 0x150   : > { %1938 = vst [vmem:[%s519_s26 + $0x10] sm:$0xff] %v1930_v32  }
 0x151 PF: > { %p12_p9 = scmp.ge.s32.totalorder %s2165_s22, 4   ;;  %s2610_s18 = smov %s2111_s19 }
 0x152   : > { %s2611_s19 = smov %s2174_s25  ;;  %s2612_s20 = smov %s2165_s22 }
 0x153   :  { %14 = sbr.rel (!%p12_p9) target bundleno = 2 (0x2), region = 123 }

</bundles_post_ra>
